<compile_context>
chip_gen: v7x
topology: tpu7x:2x2x1
jax: 0.10.0
libtpu: 0.0.40
codegen_flags: <defaults>
</compile_context>

<pallas_src>
import functools

import jax
import jax.numpy as jnp
from jax import lax
from jax.experimental import pallas as pl
from jax.experimental.pallas import tpu as pltpu


def context_block_kernel(x_ref, wm_ref, bm_ref, w1t_ref, b1_ref,
                         g_ref, beta_ref, w2t_ref, b2_ref, o_ref, *, hw):
    x = x_ref[...]                                     # (Bt, C, S)
    Bt, C, S = x.shape
    xf = x.astype(jnp.float32)

    # --- spatial_pool ('att'): 1x1 conv_mask = per-channel scale + sublane reduce
    wm = wm_ref[...][None, :, :]                       # (1, C, 1) sublane-major weights
    logits = jnp.sum(xf * wm, axis=1, keepdims=True) + bm_ref[0]   # (Bt, 1, S)

    if S != hw:  # static: mask the lane-padding columns out of the softmax
        col = lax.broadcasted_iota(jnp.int32, (1, 1, S), 2)
        logits = jnp.where(col < hw, logits, -1e30)

    m = jnp.max(logits, axis=-1, keepdims=True)        # (Bt, 1, 1)
    e = jnp.exp(logits - m)                            # (Bt, 1, S)
    denom = jnp.sum(e, axis=-1, keepdims=True)         # (Bt, 1, 1)

    # weighted global pooling: broadcast attention over channels, reduce lanes.
    ctx = jnp.sum(xf * e, axis=-1)                     # (Bt, C)
    ctx = ctx / denom[:, 0, :]                         # fold softmax normalizer

    # --- channel_add_conv: Conv1x1 -> LayerNorm(Ch) -> ReLU -> Conv1x1 ---------
    h = jnp.dot(ctx, w1t_ref[...],
                preferred_element_type=jnp.float32) + b1_ref[...]    # (Bt, Ch)
    mu = jnp.mean(h, axis=-1, keepdims=True)
    var = jnp.mean((h - mu) * (h - mu), axis=-1, keepdims=True)
    hn = (h - mu) * lax.rsqrt(var + 1e-5)
    hn = hn * g_ref[...] + beta_ref[...]
    hn = jnp.maximum(hn, 0.0)
    add = jnp.dot(hn, w2t_ref[...],
                  preferred_element_type=jnp.float32) + b2_ref[...]  # (Bt, C)

    # --- fuse: out = x + channel_add_term (broadcast over spatial) -------------
    o_ref[...] = (xf + add[:, :, None]).astype(o_ref.dtype)


def context_block3d(x, params):
    B, C, H, W = x.shape
    HW = H * W
    Ch = params["w1"].shape[0]

    # Lane-align the spatial axis (multiple of 128) for dense vst stores.
    S = pl.cdiv(HW, 128) * 128
    x2 = x.reshape(B, C, HW)
    if S != HW:
        x2 = jnp.pad(x2, ((0, 0), (0, 0), (0, S - HW)))

    # Batch tile: as large as a ~32 MiB VMEM working-set budget allows
    # (amortize the ~0.35us/step grid overhead) while keeping >=2 grid steps
    # when B >= 2 so both v7x TensorCores get work.  Budget counts the
    # double-buffered f32 in/out blocks plus in-kernel temporaries.
    bytes_per_batch = 28 * C * S
    bt_cap = max(1, (32 << 20) // bytes_per_batch)
    Bt = max(1, min(bt_cap, pl.cdiv(B, 2)))
    Bp = pl.cdiv(B, Bt) * Bt
    if Bp != B:
        x2 = jnp.pad(x2, ((0, Bp - B), (0, 0), (0, 0)))

    # Params, reshaped/transposed outside the kernel into kernel-friendly layouts.
    wm = params["w_mask"].reshape(C, 1).astype(jnp.float32)   # (C, 1) sublane-major
    bm = params["b_mask"].reshape(1).astype(jnp.float32)      # (1,) -> SMEM scalar
    w1t = params["w1"].T.astype(jnp.float32)                  # (C, Ch)
    b1 = params["b1"].reshape(1, Ch).astype(jnp.float32)      # (1, Ch)
    gamma = params["gamma"].reshape(1, Ch).astype(jnp.float32)
    beta = params["beta"].reshape(1, Ch).astype(jnp.float32)
    w2t = params["w2"].T.astype(jnp.float32)                  # (Ch, C)
    b2 = params["b2"].reshape(1, C).astype(jnp.float32)       # (1, C)

    param_bytes = 4 * (wm.size + w1t.size + b1.size + gamma.size + beta.size
                       + w2t.size + b2.size) + 16 * 4096      # incl. (8,128) tile padding
    vmem_needed = 7 * Bt * C * S * 4 + 2 * param_bytes + (4 << 20)
    vmem_limit = int(min(56 << 20, max(vmem_needed, 32 << 20)))

    kernel = functools.partial(context_block_kernel, hw=HW)

    out = pl.pallas_call(
        kernel,
        out_shape=jax.ShapeDtypeStruct((Bp, C, S), x.dtype),
        grid_spec=pltpu.PrefetchScalarGridSpec(
            num_scalar_prefetch=0,
            grid=(Bp // Bt,),
            in_specs=[
                pl.BlockSpec((Bt, C, S), lambda b: (b, 0, 0)),        # x
                pl.BlockSpec((C, 1), lambda b: (0, 0)),               # conv_mask weight
                pl.BlockSpec(memory_space=pltpu.MemorySpace.SMEM),    # conv_mask bias
                pl.BlockSpec((C, Ch), lambda b: (0, 0)),              # w1^T
                pl.BlockSpec((1, Ch), lambda b: (0, 0)),              # b1
                pl.BlockSpec((1, Ch), lambda b: (0, 0)),              # LayerNorm gamma
                pl.BlockSpec((1, Ch), lambda b: (0, 0)),              # LayerNorm beta
                pl.BlockSpec((Ch, C), lambda b: (0, 0)),              # w2^T
                pl.BlockSpec((1, C), lambda b: (0, 0)),               # b2
            ],
            out_specs=pl.BlockSpec((Bt, C, S), lambda b: (b, 0, 0)),
        ),
        compiler_params=pltpu.CompilerParams(
            dimension_semantics=("parallel",),
            vmem_limit_bytes=vmem_limit,
        ),
    )(x2, wm, bm, w1t, b1, gamma, beta, w2t, b2)

    return out[:B, :, :HW].reshape(B, C, H, W)


def reference(x, p):
    """Pure-JAX reference mirroring the PyTorch forward (pool='att', channel_add)."""
    B, C, H, W = x.shape
    xf = x.reshape(B, C, H * W)
    logits = jnp.einsum("c,bcs->bs", p["w_mask"][0], xf) + p["b_mask"][0, 0]
    attn = jax.nn.softmax(logits, axis=-1)
    context = jnp.einsum("bcs,bs->bc", xf, attn)                       # (B, C)
    h = context @ p["w1"].T + p["b1"][:, 0]                            # (B, Ch)
    mu = h.mean(axis=-1, keepdims=True)
    var = ((h - mu) ** 2).mean(axis=-1, keepdims=True)
    hn = (h - mu) / jnp.sqrt(var + 1e-5) * p["gamma"][:, 0] + p["beta"][:, 0]
    hn = jnp.maximum(hn, 0.0)
    add = hn @ p["w2"].T + p["b2"][:, 0]                               # (B, C)
    return x + add[:, :, None, None]


def init_params(key, inplanes, planes, ratio):
    Ch = planes // ratio
    ks = jax.random.split(key, 6)
    return {
        # nn.Conv2d(inplanes, 1, 1): weight (1, C, 1, 1) -> (1, C), bias (1,) -> (1, 1)
        "w_mask": jax.random.normal(ks[0], (1, inplanes), jnp.float32) * 0.1,
        "b_mask": jax.random.normal(ks[1], (1, 1), jnp.float32) * 0.1,
        # nn.Conv2d(inplanes, Ch, 1): weight (Ch, C), bias (Ch, 1)
        "w1": jax.random.normal(ks[2], (Ch, inplanes), jnp.float32) * 0.1,
        "b1": jax.random.normal(ks[3], (Ch, 1), jnp.float32) * 0.1,
        # nn.LayerNorm([Ch, 1, 1]): affine params, default-initialized
        "gamma": jnp.ones((Ch, 1), jnp.float32),
        "beta": jnp.zeros((Ch, 1), jnp.float32),
        # nn.Conv2d(Ch, inplanes, 1): weight (C, Ch), bias (C, 1)
        "w2": jax.random.normal(ks[4], (inplanes, Ch), jnp.float32) * 0.1,
        "b2": jax.random.normal(ks[5], (inplanes, 1), jnp.float32) * 0.1,
    }


if __name__ == "__main__":
    # Small config consistent with the module: inplanes=planes=32, ratio=8 -> hidden=4
    B, C, H, W = 2, 32, 16, 16
    planes, ratio = 32, 8

    key = jax.random.PRNGKey(0)
    k_x, k_p = jax.random.split(key)
    x = jax.random.normal(k_x, (B, C, H, W), jnp.float32)
    params = init_params(k_p, C, planes, ratio)

    out = context_block3d(x, params)
    out = jax.block_until_ready(out)

    ref = reference(x, params)
    assert out.shape == (B, C, H, W)
    assert jnp.allclose(out, ref, atol=1e-4, rtol=1e-4), "mismatch vs JAX reference"

    print("KERNEL_OK")
</pallas_src>

<mosaic_0001>
module attributes {stable_mosaic.version = 11 : i64} {
  func.func @context_block_kernel(%arg0: i32, %arg1: memref<1x32x256xf32, #tpu.memory_space<vmem>>, %arg2: memref<32x1xf32, #tpu.memory_space<vmem>>, %arg3: memref<1xf32, #tpu.memory_space<smem>>, %arg4: memref<32x4xf32, #tpu.memory_space<vmem>>, %arg5: memref<1x4xf32, #tpu.memory_space<vmem>>, %arg6: memref<1x4xf32, #tpu.memory_space<vmem>>, %arg7: memref<1x4xf32, #tpu.memory_space<vmem>>, %arg8: memref<4x32xf32, #tpu.memory_space<vmem>>, %arg9: memref<1x32xf32, #tpu.memory_space<vmem>>, %arg10: memref<1x32x256xf32, #tpu.memory_space<vmem>>) attributes {dimension_semantics = [#tpu.dimension_semantics<parallel>], iteration_bounds = array<i64: 2>, scalar_prefetch = 0 : i64, scratch_operands = 0 : i64, tpu.core_type = #tpu.core_type<tc>, window_params = [{transform_indices = @transform_0, window_bounds = array<i64: 1, 32, 256>}, {pipeline_mode = #tpu.pipeline_mode<synchronous>, transform_indices = @transform_1, window_bounds = array<i64: 32, 1>}, {transform_indices = @transform_2, window_bounds = array<i64: 1>}, {pipeline_mode = #tpu.pipeline_mode<synchronous>, transform_indices = @transform_3, window_bounds = array<i64: 32, 4>}, {pipeline_mode = #tpu.pipeline_mode<synchronous>, transform_indices = @transform_4, window_bounds = array<i64: 1, 4>}, {pipeline_mode = #tpu.pipeline_mode<synchronous>, transform_indices = @transform_5, window_bounds = array<i64: 1, 4>}, {pipeline_mode = #tpu.pipeline_mode<synchronous>, transform_indices = @transform_6, window_bounds = array<i64: 1, 4>}, {pipeline_mode = #tpu.pipeline_mode<synchronous>, transform_indices = @transform_7, window_bounds = array<i64: 4, 32>}, {pipeline_mode = #tpu.pipeline_mode<synchronous>, transform_indices = @transform_8, window_bounds = array<i64: 1, 32>}, {transform_indices = @transform_9, window_bounds = array<i64: 1, 32, 256>}]} {
    %c0 = arith.constant 0 : index
    %c0_0 = arith.constant 0 : index
    %c0_1 = arith.constant 0 : index
    %0 = vector.load %arg1[%c0, %c0_0, %c0_1] : memref<1x32x256xf32, #tpu.memory_space<vmem>>, vector<1x32x256xf32>
    %c0_2 = arith.constant 0 : index
    %c0_3 = arith.constant 0 : index
    %1 = vector.load %arg2[%c0_2, %c0_3] : memref<32x1xf32, #tpu.memory_space<vmem>>, vector<32x1xf32>
    %2 = vector.shape_cast %1 : vector<32x1xf32> to vector<1x32x1xf32>
    %3 = vector.broadcast %2 : vector<1x32x1xf32> to vector<1x32x256xf32>
    %4 = arith.mulf %0, %3 : vector<1x32x256xf32>
    %cst = arith.constant dense<0.000000e+00> : vector<1x256xf32>
    %5 = vector.multi_reduction <add>, %4, %cst [1] : vector<1x32x256xf32> to vector<1x256xf32>
    %6 = vector.shape_cast %5 : vector<1x256xf32> to vector<1x1x256xf32>
    %c0_4 = arith.constant 0 : index
    %7 = memref.load %arg3[%c0_4] : memref<1xf32, #tpu.memory_space<smem>>
    %8 = vector.broadcast %7 : f32 to vector<1x1x256xf32>
    %9 = arith.addf %6, %8 : vector<1x1x256xf32>
    %cst_5 = arith.constant dense<0xFF800000> : vector<1x1xf32>
    %10 = vector.multi_reduction <maximumf>, %9, %cst_5 [2] : vector<1x1x256xf32> to vector<1x1xf32>
    %11 = vector.shape_cast %10 : vector<1x1xf32> to vector<1x1x1xf32>
    %12 = vector.broadcast %11 : vector<1x1x1xf32> to vector<1x1x256xf32>
    %13 = arith.subf %9, %12 : vector<1x1x256xf32>
    %14 = math.exp %13 : vector<1x1x256xf32>
    %cst_6 = arith.constant dense<0.000000e+00> : vector<1x1xf32>
    %15 = vector.multi_reduction <add>, %14, %cst_6 [2] : vector<1x1x256xf32> to vector<1x1xf32>
    %16 = vector.shape_cast %15 : vector<1x1xf32> to vector<1x1x1xf32>
    %17 = vector.broadcast %14 : vector<1x1x256xf32> to vector<1x32x256xf32>
    %18 = arith.mulf %0, %17 : vector<1x32x256xf32>
    %cst_7 = arith.constant dense<0.000000e+00> : vector<1x32xf32>
    %19 = vector.multi_reduction <add>, %18, %cst_7 [2] : vector<1x32x256xf32> to vector<1x32xf32>
    %20 = vector.shape_cast %16 : vector<1x1x1xf32> to vector<1x1xf32>
    %21 = vector.broadcast %20 : vector<1x1xf32> to vector<1x32xf32>
    %22 = arith.divf %19, %21 : vector<1x32xf32>
    %c0_8 = arith.constant 0 : index
    %c0_9 = arith.constant 0 : index
    %23 = vector.load %arg4[%c0_8, %c0_9] : memref<32x4xf32, #tpu.memory_space<vmem>>, vector<32x4xf32>
    %cst_10 = arith.constant dense<0.000000e+00> : vector<1x4xf32>
    %24 = tpu.matmul %22, %23, %cst_10 {dimension_numbers = #tpu.dot_dimension_numbers<[1], [0], [0], [1], [0, 0, 1, 1], [], []>} : vector<1x32xf32>, vector<32x4xf32>, vector<1x4xf32> -> vector<1x4xf32>
    %c0_11 = arith.constant 0 : index
    %c0_12 = arith.constant 0 : index
    %25 = vector.load %arg5[%c0_11, %c0_12] : memref<1x4xf32, #tpu.memory_space<vmem>>, vector<1x4xf32>
    %26 = arith.addf %24, %25 : vector<1x4xf32>
    %cst_13 = arith.constant dense<0.000000e+00> : vector<1xf32>
    %27 = vector.multi_reduction <add>, %26, %cst_13 [1] : vector<1x4xf32> to vector<1xf32>
    %28 = vector.shape_cast %27 : vector<1xf32> to vector<1x1xf32>
    %cst_14 = arith.constant 4.000000e+00 : f32
    %29 = vector.broadcast %cst_14 : f32 to vector<1x1xf32>
    %30 = arith.divf %28, %29 : vector<1x1xf32>
    %31 = vector.broadcast %30 : vector<1x1xf32> to vector<1x4xf32>
    %32 = arith.subf %26, %31 : vector<1x4xf32>
    %33 = vector.broadcast %30 : vector<1x1xf32> to vector<1x4xf32>
    %34 = arith.subf %26, %33 : vector<1x4xf32>
    %35 = arith.mulf %32, %34 : vector<1x4xf32>
    %cst_15 = arith.constant dense<0.000000e+00> : vector<1xf32>
    %36 = vector.multi_reduction <add>, %35, %cst_15 [1] : vector<1x4xf32> to vector<1xf32>
    %37 = vector.shape_cast %36 : vector<1xf32> to vector<1x1xf32>
    %cst_16 = arith.constant 4.000000e+00 : f32
    %38 = vector.broadcast %cst_16 : f32 to vector<1x1xf32>
    %39 = arith.divf %37, %38 : vector<1x1xf32>
    %40 = vector.broadcast %30 : vector<1x1xf32> to vector<1x4xf32>
    %41 = arith.subf %26, %40 : vector<1x4xf32>
    %cst_17 = arith.constant 9.99999974E-6 : f32
    %42 = vector.broadcast %cst_17 : f32 to vector<1x1xf32>
    %43 = arith.addf %39, %42 : vector<1x1xf32>
    %44 = math.rsqrt %43 : vector<1x1xf32>
    %45 = vector.broadcast %44 : vector<1x1xf32> to vector<1x4xf32>
    %46 = arith.mulf %41, %45 : vector<1x4xf32>
    %c0_18 = arith.constant 0 : index
    %c0_19 = arith.constant 0 : index
    %47 = vector.load %arg6[%c0_18, %c0_19] : memref<1x4xf32, #tpu.memory_space<vmem>>, vector<1x4xf32>
    %48 = arith.mulf %46, %47 : vector<1x4xf32>
    %c0_20 = arith.constant 0 : index
    %c0_21 = arith.constant 0 : index
    %49 = vector.load %arg7[%c0_20, %c0_21] : memref<1x4xf32, #tpu.memory_space<vmem>>, vector<1x4xf32>
    %50 = arith.addf %48, %49 : vector<1x4xf32>
    %cst_22 = arith.constant 0.000000e+00 : f32
    %51 = vector.broadcast %cst_22 : f32 to vector<1x4xf32>
    %52 = arith.maximumf %50, %51 : vector<1x4xf32>
    %c0_23 = arith.constant 0 : index
    %c0_24 = arith.constant 0 : index
    %53 = vector.load %arg8[%c0_23, %c0_24] : memref<4x32xf32, #tpu.memory_space<vmem>>, vector<4x32xf32>
    %cst_25 = arith.constant dense<0.000000e+00> : vector<1x32xf32>
    %54 = tpu.matmul %52, %53, %cst_25 {dimension_numbers = #tpu.dot_dimension_numbers<[1], [0], [0], [1], [0, 0, 1, 1], [], []>} : vector<1x4xf32>, vector<4x32xf32>, vector<1x32xf32> -> vector<1x32xf32>
    %c0_26 = arith.constant 0 : index
    %c0_27 = arith.constant 0 : index
    %55 = vector.load %arg9[%c0_26, %c0_27] : memref<1x32xf32, #tpu.memory_space<vmem>>, vector<1x32xf32>
    %56 = arith.addf %54, %55 : vector<1x32xf32>
    %57 = vector.shape_cast %56 : vector<1x32xf32> to vector<1x32x1xf32>
    %58 = vector.broadcast %57 : vector<1x32x1xf32> to vector<1x32x256xf32>
    %59 = arith.addf %0, %58 : vector<1x32x256xf32>
    %c0_28 = arith.constant 0 : index
    %c0_29 = arith.constant 0 : index
    %c0_30 = arith.constant 0 : index
    %60 = vector.load %arg10[%c0_28, %c0_29, %c0_30] : memref<1x32x256xf32, #tpu.memory_space<vmem>>, vector<1x32x256xf32>
    tpu.vector_store %arg10[%c0_28, %c0_29, %c0_30], %59 {strides = array<i32>} : memref<1x32x256xf32, #tpu.memory_space<vmem>>, vector<1x32x256xf32>,
    return
  }
  func.func @transform_0(%arg0: i32) -> (i32, i32, i32) {
    %c0_i32 = arith.constant 0 : i32
    %c0_i32_0 = arith.constant 0 : i32
    %c0_i32_1 = arith.constant 0 : i32
    return %arg0, %c0_i32, %c0_i32_0 : i32, i32, i32
  }
  func.func @transform_1(%arg0: i32) -> (i32, i32) {
    %c0_i32 = arith.constant 0 : i32
    %c0_i32_0 = arith.constant 0 : i32
    %c0_i32_1 = arith.constant 0 : i32
    return %c0_i32, %c0_i32_0 : i32, i32
  }
  func.func @transform_2(%arg0: i32) -> i32 {
    %c0_i32 = arith.constant 0 : i32
    %c0_i32_0 = arith.constant 0 : i32
    return %c0_i32 : i32
  }
  func.func @transform_3(%arg0: i32) -> (i32, i32) {
    %c0_i32 = arith.constant 0 : i32
    %c0_i32_0 = arith.constant 0 : i32
    %c0_i32_1 = arith.constant 0 : i32
    return %c0_i32, %c0_i32_0 : i32, i32
  }
  func.func @transform_4(%arg0: i32) -> (i32, i32) {
    %c0_i32 = arith.constant 0 : i32
    %c0_i32_0 = arith.constant 0 : i32
    %c0_i32_1 = arith.constant 0 : i32
    return %c0_i32, %c0_i32_0 : i32, i32
  }
  func.func @transform_5(%arg0: i32) -> (i32, i32) {
    %c0_i32 = arith.constant 0 : i32
    %c0_i32_0 = arith.constant 0 : i32
    %c0_i32_1 = arith.constant 0 : i32
    return %c0_i32, %c0_i32_0 : i32, i32
  }
  func.func @transform_6(%arg0: i32) -> (i32, i32) {
    %c0_i32 = arith.constant 0 : i32
    %c0_i32_0 = arith.constant 0 : i32
    %c0_i32_1 = arith.constant 0 : i32
    return %c0_i32, %c0_i32_0 : i32, i32
  }
  func.func @transform_7(%arg0: i32) -> (i32, i32) {
    %c0_i32 = arith.constant 0 : i32
    %c0_i32_0 = arith.constant 0 : i32
    %c0_i32_1 = arith.constant 0 : i32
    return %c0_i32, %c0_i32_0 : i32, i32
  }
  func.func @transform_8(%arg0: i32) -> (i32, i32) {
    %c0_i32 = arith.constant 0 : i32
    %c0_i32_0 = arith.constant 0 : i32
    %c0_i32_1 = arith.constant 0 : i32
    return %c0_i32, %c0_i32_0 : i32, i32
  }
  func.func @transform_9(%arg0: i32) -> (i32, i32, i32) {
    %c0_i32 = arith.constant 0 : i32
    %c0_i32_0 = arith.constant 0 : i32
    %c0_i32_1 = arith.constant 0 : i32
    return %arg0, %c0_i32, %c0_i32_0 : i32, i32, i32
  }
}

</mosaic_0001>

<bundles_post_ra>
// kernel: tpu_custom_call.1
= control target key start
LH: loop header
LB: loop body
LE: loop exit
PB: predicated region body
PF: predicated region fallthrough
CT: control target
= control target key end

     0   :  { %s1307_s0 = inlined_call_operand.hbm [shape: f32[2,32,256], index: 0, kind: input, shape index: {}]   ;;  %s1308_s1 = inlined_call_operand.vmem [shape: f32[32,1], index: 1, kind: input, shape index: {}]   ;;  %s1309_s2 = inlined_call_operand.<no memory space> [shape: f32[1], index: 2, kind: input, shape index: {}]   ;;  %s1310_s3 = inlined_call_operand.vmem [shape: f32[32,4], index: 3, kind: input, shape index: {}]   ;;  %s1311_s4 = inlined_call_operand.vmem [shape: f32[1,4], index: 4, kind: input, shape index: {}]   ;;  %s1312_s5 = inlined_call_operand.vmem [shape: f32[1,4], index: 5, kind: input, shape index: {}]   ;;  %s1313_s6 = inlined_call_operand.vmem [shape: f32[1,4], index: 6, kind: input, shape index: {}]   ;;  %s1314_s7 = inlined_call_operand.vmem [shape: f32[4,32], index: 7, kind: input, shape index: {}]   ;;  %s1315_s8 = inlined_call_operand.vmem [shape: f32[1,32], index: 8, kind: input, shape index: {}]   ;;  %s1316_s9 = inlined_call_operand.hbm [shape: f32[2,32,256], index: 9, kind: output, shape index: {}]  }
   0x1   :  { %14 = sst [smem:[#allocation2]] %s1309_s2 }
   0x2   :  { %15 = vsyncpa [#allocation4], 0 }
   0x3   :  { %17 = vsyncpa [#allocation4 + $0x1], 0 }
   0x4   :  { %18 = vsyncpa [#allocation5], 0 }
   0x5   :  { %20 = vsyncpa [#allocation5 + $0x1], 0  ;;  %s1055_s11 = smov 0   ;;  %s1057_s12 = smov 0  }
   0x6   :  { %s1059_s13 = smov 0   ;;  %s1061_s14 = smov 0  }
   0x7 LB: > { %s1076_s2 = sadd.s32 4294967295, %s990_s14   ;;  %s782_s15 = sadd.s32 4294967294, %s990_s14   ;;  %s990_s14 = sphi %s1061_s14, %s1329_s14   ;;  %s986_s13 = sphi %s1059_s13, %s1328_s13   ;;  %s982_s12 = sphi %s1057_s12, %s1327_s12   ;;  %s978_s11 = sphi %s1055_s11, %s1326_s11  }
   0x8   : > { %s1080_s16 = sadd.s32 1, %s990_s14   ;;  %s33_s17 = sadd.s32 1, %s986_s13 }
   0x9   : > { %s30_s18 = ssub.s32 %s990_s14, %s1080_s16  ;;  %p40_p0 = scmp.ne.s32.totalorder %s986_s13, %s982_s12 }
   0xa   : > { %p31_p1 = scmp.eq.s32.totalorder %s30_s18, 0  ;;  %p41_p2 = scmp.eq.s32.totalorder %s990_s14, 0 }
   0xb   : > { %p46_p3 = scmp.ne.s32.totalorder %s982_s12, %s978_s11  ;;  %p47_p4 = scmp.eq.s32.totalorder %s1076_s2, 0 }
   0xc   : > { %s1092_s19 = scalar_select %p31_p1, %s986_s13, %s33_s17  }
   0xd   : > { %p1094_p5 = por %p41_p2, %p40_p0  ;;  %p1098_p6 = por %p47_p4, %p46_p3 }
   0xe   : > { %p238_p7 = scmp.eq.s32.totalorder %s1076_s2, 1  ;;  %p244_p8 = scmp.eq.s32.totalorder %s782_s15, 1 }
   0xf   : > { %p842_p10 = scmp.lt.s32.totalorder %s990_s14, 2  ;;  %s288_s24 = sand.u32 1, %s986_s13  }
  0x10   : > { %p1105_p11 = por %p238_p7, %p40_p0  ;;  %p1109_p12 = por %p244_p8, %p46_p3 }
  0x11   : > { %s799_s25 = sshll.u32 %s990_s14, 10  ;;  %s785_s26 = sshll.u32 %s288_s24, 6 }
  0x12   : > { %s1320_s22 = scalar_select %p1105_p11, 1, 0 }
  0x13   : > { %s1321_s23 = scalar_select %p1109_p12, 1, 0 }
  0x14   : > { %s1118_s29 = scalar_lea.hbm %s1307_s0, %s799_s25  ;;  %s292_s30 = scalar_lea.vmem [#allocation3], %s785_s26 }
  0x15   : > { %s299_s10 = sshll.u32 %s292_s30, 4  ;;  %p1122_p13 = pnand %p842_p10, %p1094_p5  ;;  %s1126_s10 = int_to_ptr.vmem [resolvable:$true] %s299_s10 }
  0x16   : > { %s1128_s17 = scalar_lea.sflag [#allocation4], %s288_s24  ;;  %s894_s18 = scalar_lea.hbm %s1118_s29, 1024 }
  0x17   : > { %p895_p0 = scmp.ne.s32.totalorder %s1118_s29, %s894_s18  ;;  %p896_p1 = pneg %p1122_p13 }
  0x18   : > { %s899_s26 = scalar_lea.hbm %s1307_s0, 2048  ;;  %p900_p4 = scmp.lt.u32.totalorder %s1118_s29, %s1307_s0 }
  0x19   : > { %p897_p2 = pnand %p896_p1, %p895_p0  ;;  %p901_p5 = scmp.lt.u32.totalorder %s899_s26, %s894_s18 }
  0x1a   : > { %p903_p8 = scmp.lt.u32.totalorder %s894_s18, %s1118_s29 }
  0x1b   : > { %p898_p3 = pneg %p897_p2  ;;  %p902_p7 = por %p901_p5, %p900_p4 }
  0x1d   : > { %p904_p10 = por %p903_p8, %p902_p7 }
  0x1f   : > { %p905_p9 = pnand %p904_p10, %p898_p3 }
  0x21   : > { %908 = shalt.err (!%p905_p9)
}
  0x22   : > { %s909_s24 = scalar_lea.vmem %s1126_s10, 1024  ;;  %s992_s30 = smov [#allocation3]  }
  0x23   : > { %p910_p0 = scmp.ne.s32.totalorder %s1126_s10, %s909_s24  ;;  %s914_s25 = sshll.u32 %s992_s30, 4  ;;  %s915_s25 = int_to_ptr.vmem [resolvable:$false] %s914_s25 }
  0x24   : > { %s916_s20 = scalar_lea.vmem %s915_s25, 2048  ;;  %p917_p11 = scmp.lt.s32.totalorder %s1126_s10, %s915_s25 }
  0x25   : > { %p912_p2 = pnand %p910_p0, %p896_p1  ;;  %p918_p4 = scmp.lt.s32.totalorder %s916_s20, %s909_s24 }
  0x27   : > { %p913_p12 = pneg %p912_p2  ;;  %p919_p5 = por %p918_p4, %p917_p11 }
  0x29   : > { %p920_p7 = pnand %p919_p5, %p913_p12 }
  0x2b   : > { %923 = shalt.err (!%p920_p7)
}
  0x2c   : > { %s993_s18 = smov 256   ;;  %s994_s26 = smov 16  }
  0x2d   : > { %837 = dma.hbm_to_vmem [thread:$0]  (!%p1122_p13), %s1118_s29, 1024, %s1126_s10, %s1128_s17, %s993_s18, %s993_s18, %s994_s26  }
  0x2e   : > { %p788_p9 = scmp.ge.s32.totalorder %s990_s14, 1  ;;  %p307_p1 = scmp.lt.s32.totalorder %s990_s14, 3 }
  0x30   : > { %p308_p3 = pnand %p788_p9, %p307_p1 }
  0x31   : > { %s1159_s27 = sand.u32 (!%p308_p3), 1, %s982_s12  }
  0x32   : > { %311 = sbr.rel (%p308_p3) target bundleno = 1421 (0x58d), region = 56  ;;  %s789_s28 = sshll.u32 (!%p308_p3), %s1159_s27, 6 }
  0x33   : > { %s314_s24 = scalar_lea.sflag (!%p308_p3), [#allocation4], %s1159_s27  ;;  %s317_s30 = scalar_lea.vmem (!%p308_p3), [#allocation3], %s789_s28 }
  0x39   : > { %969 = dma.done.wait (%p1098_p6), %s314_s24, 1024  }
  0x3a   : > { %971 = vsyncadd (%p1098_p6), %s314_s24, 4294966272  ;;  %v995_v0 = vmov 0   ;;  %v362_v1 = vld [vmem:[%s1308_s1 + $0x10] sm:$0xff]  ;;  %v360_v2 = vld [vmem:[%s1308_s1] sm:$0xff]  ;;  %s410_s26 = sld [smem:[#allocation2]]  ;;  %vm997_vm0 = vmmov 0  }
  0x3b   : > { %885 = vset.pattern.permute.xlu1 %v995_v0  ;;  %884 = vset.pattern.permute.xlu0 %v995_v0  ;;  %v363_v3 = vld [vmem:[%s1308_s1 + $0x18] sm:$0xff]  ;;  %v361_v4 = vld [vmem:[%s1308_s1 + $0x8] sm:$0xff]  ;;  %v1181_v7 = vld [vmem:[%s317_s30] sm:$0xff]  ;;  %vm471_vm1 = vcmask 130112   ;;  %vm478_vm2 = vcmask 195712   ;;  %vm485_vm3 = vcmask 261312  }
  0x3c   : > { %376 = vperm.xlu1 %885, %v362_v1   ;;  %366 = vperm.xlu0 %884, %v360_v2   ;;  %v1183_v8 = vld [vmem:[%s317_s30 + $0x8] sm:$0xff]  ;;  %v1185_v9 = vld [vmem:[%s317_s30 + $0x10] sm:$0xff]  ;;  %v1187_v10 = vld [vmem:[%s317_s30 + $0x18] sm:$0xff]  ;;  %vm487_vm4 = vcmask 261120   ;;  %vm560_vm5 = vcmask 24576   ;;  %vm586_vm6 = vcmask 1043456  }
  0x3d   : > { %v1189_v11 = vld [vmem:[%s317_s30 + $0x20] sm:$0xff]  ;;  %v1191_v12 = vld [vmem:[%s317_s30 + $0x28] sm:$0xff]  ;;  %v1197_v19 = vld [vmem:[%s317_s30 + $0x30] sm:$0xff]  ;;  %vm582_vm7 = vcmask 31744   ;;  %s351_s20 = scalar_lea.vmem [#allocation6], %s789_s28  ;;  %s800_s21 = sshll.u32 %s1076_s2, 10 }
  0x3e   : > { %v1199_v20 = vld [vmem:[%s317_s30 + $0x38] sm:$0xff]  ;;  %s709_s18 = sshll.u32 %s351_s20, 4  ;;  %s1261_s24 = scalar_lea.hbm %s1316_s9, %s800_s21  ;;  %s1256_s18 = int_to_ptr.vmem [resolvable:$true] %s709_s18 }
  0x3f   : > { %s696_s2 = scalar_lea.sflag [#allocation5], %s1159_s27  ;;  %s924_s30 = scalar_lea.vmem %s1256_s18, 1024 }
  0x40   : > { %381 = vperm.xlu1 %885, %v363_v3   ;;  %371 = vperm.xlu0 %884, %v361_v4   ;;  %v411_v41 = vstv %s410_s26  ;;  %v451_v3 = vld [vmem:[%s1310_s3] sm:$0xff]  ;;  %v452_v4 = vld [vmem:[%s1310_s3 + $0x8] sm:$0xff]  ;;  %p925_p6 = scmp.ne.s32.totalorder %s1256_s18, %s924_s30  ;;  %p1323_p11 = scmp.ne.s32.totalorder %s1320_s22, 0 }
  0x41   : > { %s999_s29 = smov [#allocation6]  }
  0x42   : > { %p926_p12 = pnand %p925_p6, %p1323_p11  ;;  %s928_s10 = sshll.u32 %s999_s29, 4  ;;  %s929_s10 = int_to_ptr.vmem [resolvable:$false] %s928_s10 }
  0x43   : > { %s930_s15 = scalar_lea.vmem %s929_s10, 2048  ;;  %p931_p8 = scmp.lt.s32.totalorder %s1256_s18, %s929_s10 }
  0x44   : > { %p927_p13 = pneg %p926_p12  ;;  %p932_p10 = scmp.lt.s32.totalorder %s930_s15, %s924_s30 }
  0x46   : > { %p933_p0 = por %p932_p10, %p931_p8 }
  0x48   : > { %p934_p2 = pnand %p933_p0, %p927_p13 }
  0xbb   : > { %v377_v5 = vpop.permute.xlu1 %376  ;;  %v367_v6 = vpop.permute.xlu0 %366 }
  0xbc   : > { %v384_v14 = vmul.f32 %v367_v6, %v1181_v7  ;;  %v385_v15 = vmul.f32 %v367_v6, %v1183_v8  ;;  %v388_v21 = vmul.f32 %v377_v5, %v1189_v11  ;;  %v389_v22 = vmul.f32 %v377_v5, %v1191_v12 }
  0xbd   : > { %v996_v5 = vmov 0.0|0.0   ;;  %v825_v6 = vpack.c.bf16 %v452_v4, %v451_v3  ;;  %v581_v3 = vld [vmem:[%s1315_s8] sm:$0x1] }
  0xbe   : > { %824 = vmatprep.subr.bf16.mxu0 %v996_v5 }
  0xbf   : > { %v372_v13 = vpop.permute.xlu0 %371  ;;  %v382_v18 = vpop.permute.xlu1 %381  ;;  %826 = vmatpush3.bf16.msra.mxu0 %v825_v6 }
  0xc0   : > { %v386_v16 = vmul.f32 %v372_v13, %v1185_v9  ;;  %v387_v17 = vmul.f32 %v372_v13, %v1187_v10  ;;  %v390_v25 = vmul.f32 %v382_v18, %v1197_v19  ;;  %v391_v26 = vmul.f32 %v382_v18, %v1199_v20  ;;  %v453_v13 = vld [vmem:[%s1310_s3 + $0x10] sm:$0xff]  ;;  %827 = vmatprep.subr.bf16.mxu0 %v996_v5 }
  0xc2   : > { %v392_v23 = vadd.f32 %v386_v16, %v384_v14  ;;  %v401_v24 = vadd.f32 %v387_v17, %v385_v15  ;;  %v454_v14 = vld [vmem:[%s1310_s3 + $0x18] sm:$0xff]  ;;  %v998_v16 = vmov 0.0   ;;  %v460_v17 = vlaneseq }
  0xc3   : > { %v828_v15 = vpack.c.bf16 %v454_v14, %v453_v13  ;;  %816 = vmatprep.mubr.msk.f32.mxu0 %vm997_vm0, %v998_v16  ;;  %819 = vmatprep.subr.mxu1 %v998_v16 }
  0xc4   : > { %v393_v27 = vadd.f32 %v392_v23, %v388_v21  ;;  %v402_v28 = vadd.f32 %v401_v24, %v389_v22  ;;  %821 = vmatprep.mubr.msk.f32.mxu1 %vm997_vm0, %v998_v16  ;;  %v461_v21 = vand.u32 127, %v460_v17  ;;  %v1225_v23 = vshrl.u32 %v460_v17, 7 }
  0xc5   : > { %829 = vmatpush3.bf16.msra.mxu0 %v828_v15 }
  0xc6   : > { %v394_v29 = vadd.f32 %v393_v27, %v390_v25  ;;  %v403_v30 = vadd.f32 %v402_v28, %v391_v26  ;;  %v473_v24 = vadd.s32 4294967280, %v461_v21  ;;  %v466_v25 = vadd.s32 4294967288, %v461_v21 }
  0xc7   : > { %v480_v27 = vadd.s32 4294967272, %v461_v21  ;;  %v464_v28 = vsub.s32 %v461_v21, %v1225_v23  ;;  %v662_v4 = vsub.s32 0, %v1225_v23 }
  0xc8   : > { %v395_v31 = vrot.slane %v394_v29, 4  ;;  %v404_v32 = vrot.slane %v403_v30, 4 }
  0xca   : > { %v396_v33 = vadd.f32 %v395_v31, %v394_v29  ;;  %v405_v34 = vadd.f32 %v404_v32, %v403_v30  ;;  %v476_v29 = vsub.s32 %v473_v24, %v1225_v23  ;;  %v469_v30 = vsub.s32 %v466_v25, %v1225_v23 }
  0xcc   : > { %v397_v35 = vrot.slane %v396_v33, 2  ;;  %v406_v36 = vrot.slane %v405_v34, 2 }
  0xce   : > { %v398_v37 = vadd.f32 %v397_v35, %v396_v33  ;;  %v407_v38 = vadd.f32 %v406_v36, %v405_v34  ;;  %v483_v34 = vsub.s32 %v480_v27, %v1225_v23 }
  0xd0   : > { %v399_v39 = vrot.slane %v398_v37, 1  ;;  %v408_v40 = vrot.slane %v407_v38, 1 }
  0xd2   : > { %v400_v42 = vadd.f32 %v399_v39, %v398_v37  ;;  %v409_v43 = vadd.f32 %v408_v40, %v407_v38 }
  0xd4   : > { %v412_v44 = vadd.f32 %v411_v41, %v400_v42  ;;  %v413_v45 = vadd.f32 %v411_v41, %v409_v43 }
  0xd6   : > { %v414_v46 = vmax.f32 %v412_v44, %v413_v45 }
  0xd8   : > { %415 = vmax.xlane.f32.xlu0 %v414_v46  ;;  %v455_v46 = vld [vmem:[%s1311_s4] sm:$0x1] }
 0x165   : > { %v416_v47 = vpop.xlane.xlu0 %415 }
 0x166   : > { %v417_v48 = vsub.f32 %v412_v44, %v416_v47  ;;  %v418_v49 = vsub.f32 %v413_v45, %v416_v47 }
 0x168   : > { %v419_v50 = vmul.f32 1.442695, %v417_v48  ;;  %v421_v51 = vmul.f32 1.442695, %v418_v49 }
 0x16a   : > { %886 = vpow2.f32 %v419_v50 }
 0x16b   : > { %888 = vpow2.f32 %v421_v51 }
 0x174   : > { %v887_v52 = vpop.eup %886 }
 0x175   : > { %v889_v53 = vpop.eup %888  ;;  %v426_v54 = vmul.f32 %v887_v52, %v1181_v7  ;;  %v430_v57 = vmul.f32 %v887_v52, %v1189_v11  ;;  %v428_v60 = vmul.f32 %v887_v52, %v1185_v9  ;;  %v432_v0 = vmul.f32 %v887_v52, %v1197_v19 }
 0x176   : > { %v423_v55 = vadd.f32 %v889_v53, %v887_v52  ;;  %v427_v56 = vmul.f32 %v889_v53, %v1183_v8  ;;  %v431_v58 = vmul.f32 %v889_v53, %v1191_v12  ;;  %v429_v61 = vmul.f32 %v889_v53, %v1187_v10 }
 0x177   : > { %v433_v1 = vmul.f32 %v889_v53, %v1199_v20 }
 0x178   : > { %424 = vadd.xlane.f32.xlu1 %v423_v55  ;;  %v434_v59 = vadd.f32 %v427_v56, %v426_v54  ;;  %v440_v62 = vadd.f32 %v431_v58, %v430_v57  ;;  %v437_v63 = vadd.f32 %v429_v61, %v428_v60  ;;  %v580_v56 = vld [vmem:[%s1314_s7] sm:$0xf] }
 0x179   : > { %v443_v2 = vadd.f32 %v433_v1, %v432_v0  ;;  %820 = vmatpush3.msk.msra.mxu1 %vm586_vm6, %v580_v56  ;;  %v575_v61 = vld [vmem:[%s1312_s5] sm:$0x1] }
 0x17a   : > { %435 = vadd.xlane.f32.xlu0 %v434_v59 }
 0x17c   : > { %441 = vadd.xlane.f32.xlu1 %v440_v62 }
 0x17e   : > { %438 = vadd.xlane.f32.xlu0 %v437_v63  ;;  %v577_v63 = vld [vmem:[%s1313_s6] sm:$0x1] }
 0x182   : > { %444 = vadd.xlane.f32.xlu0 %v443_v2 }
 0x205   : > { %v425_v18 = vpop.xlane.xlu1 %424 }
 0x206   : > { %890 = vrcp.f32 %v425_v18 }
 0x207   : > { %v436_v22 = vpop.xlane.xlu0 %435 }
 0x209   : > { %v442_v33 = vpop.xlane.xlu1 %441 }
 0x20b   : > { %v439_v26 = vpop.xlane.xlu0 %438 }
 0x20f   : > { %v445_v31 = vpop.xlane.xlu0 %444 }
 0x210   : > { %v891_v32 = vpop.eup %890 }
 0x211   : > { %v447_v35 = vmul.f32 %v891_v32, %v436_v22  ;;  %v449_v36 = vmul.f32 %v891_v32, %v442_v33  ;;  %v448_v37 = vmul.f32 %v891_v32, %v439_v26  ;;  %v450_v38 = vmul.f32 %v891_v32, %v445_v31 }
 0x213   : > { %v465_v39 = vrot.slane %v447_v35, %v464_v28  ;;  %v477_v40 = vrot.slane %v449_v36, %v476_v29  ;;  %v470_v41 = vrot.slane %v448_v37, %v469_v30  ;;  %v484_v43 = vrot.slane %v450_v38, %v483_v34 }
 0x215   : > { %v472_v42 = vsel %vm471_vm1, %v470_v41, %v465_v39 }
 0x216   : > { %v479_v44 = vsel %vm478_vm2, %v477_v40, %v472_v42 }
 0x217   : > { %v486_v45 = vsel %vm485_vm3, %v484_v43, %v479_v44 }
 0x218   : > { %817 = vmatmul.mubr.msk.f32.vlgmr.msra.gmra.mrb[0].mxu0 %vm487_vm4, %v486_v45 }
 0x2eb   : > { %v556_v47 = vpop.f32.mrb[0].mxu0 }
 0x2ec   : > { %v557_v48 = vadd.f32 %v556_v47, %v455_v46  ;;  %v818_v49 = vpop.f32.mrb[1].mxu0 }
 0x2ee   : > { %v561_v50 = vsel %vm560_vm5, %v557_v48, 0.0 }
 0x2ef   : > { %562 = vadd.xlane.f32.xlu1 %v561_v50 }
 0x37c   : > { %v563_v51 = vpop.xlane.xlu1 %562 }
 0x37d   : > { %v565_v52 = vmul.f32 0.25, %v563_v51 }
 0x37f   : > { %v566_v53 = vsub.f32 %v557_v48, %v565_v52 }
 0x381   : > { %v567_v54 = vmul.f32 %v566_v53, %v566_v53 }
 0x383   : > { %v568_v55 = vsel %vm560_vm5, %v567_v54, 0.0 }
 0x384   : > { %569 = vadd.xlane.f32.xlu0 %v568_v55 }
 0x411   : > { %v570_v57 = vpop.xlane.xlu0 %569 }
 0x412   : > { %v571_v58 = vmul.f32 0.25, %v570_v57 }
 0x414   : > { %v572_v59 = vadd.f32 1e-05, %v571_v58 }
 0x416   : > { %892 = vrsqrt.f32 %v572_v59 }
 0x420   : > { %v893_v60 = vpop.eup %892 }
 0x421   : > { %v574_v62 = vmul.f32 %v893_v60, %v566_v53 }
 0x423   : > { %v576_v0 = vmul.f32 %v575_v61, %v574_v62 }
 0x425   : > { %v578_v1 = vadd.f32 %v577_v63, %v576_v0 }
 0x427   : > { %v579_v2 = vmax.f32 %v578_v1, 0.0 }
 0x429   : > { %822 = vmatmul.mubr.msk.f32.vlgmr.msra.gmra.mrb[0].mxu1 %vm582_vm7, %v579_v2 }
 0x4fc   : > { %v656_v5 = vpop.f32.mrb[0].mxu1 }
 0x4fd   : > { %v657_v6 = vadd.f32 %v656_v5, %v581_v3  ;;  %v823_v13 = vpop.f32.mrb[1].mxu1 }
 0x4ff   : > { %v663_v14 = vrot.slane %v657_v6, %v662_v4 }
 0x501   : > { %669 = vbcast.lane.b32.xlu0 %v663_v14, 264  ;;  %665 = vbcast.lane.b32.xlu1 %v663_v14, 256 }
 0x505   : > { %673 = vbcast.lane.b32.xlu1 %v663_v14, 272 }
 0x509   : > { %677 = vbcast.lane.b32.xlu1 %v663_v14, 280 }
 0x573   : > { %v670_v15 = vpop.permute.xlu0 %669  ;;  %v666_v16 = vpop.permute.xlu1 %665 }
 0x574   : > { %v681_v17 = vadd.f32 %v670_v15, %v1185_v9  ;;  %v682_v18 = vadd.f32 %v670_v15, %v1187_v10  ;;  %v679_v21 = vadd.f32 %v666_v16, %v1181_v7  ;;  %v680_v22 = vadd.f32 %v666_v16, %v1183_v8 }
 0x576   : > { %689 = vst [vmem:[%s351_s20 + $0x10] sm:$0xff] %v681_v17  ;;  %690 = vst [vmem:[%s351_s20 + $0x18] sm:$0xff] %v682_v18 }
 0x577   : > { %687 = vst [vmem:[%s351_s20] sm:$0xff] %v679_v21  ;;  %688 = vst [vmem:[%s351_s20 + $0x8] sm:$0xff] %v680_v22  ;;  %v674_v23 = vpop.permute.xlu1 %673 }
 0x578   : > { %v683_v24 = vadd.f32 %v674_v23, %v1189_v11  ;;  %v684_v9 = vadd.f32 %v674_v23, %v1191_v12 }
 0x57a   : > { %691 = vst [vmem:[%s351_s20 + $0x20] sm:$0xff] %v683_v24  ;;  %692 = vst [vmem:[%s351_s20 + $0x28] sm:$0xff] %v684_v9 }
 0x57b   : > { %v678_v7 = vpop.permute.xlu1 %677 }
 0x57c   : > { %v685_v8 = vadd.f32 %v678_v7, %v1197_v19  ;;  %v686_v10 = vadd.f32 %v678_v7, %v1199_v20 }
 0x57e   : > { %693 = vst [vmem:[%s351_s20 + $0x30] sm:$0xff] %v685_v8  ;;  %694 = vst [vmem:[%s351_s20 + $0x38] sm:$0xff] %v686_v10 }
 0x57f   : > { %937 = shalt.err (!%p934_p2)
}
 0x580   : > { %s938_s17 = scalar_lea.hbm %s1261_s24, 1024  ;;  %s942_s21 = scalar_lea.hbm %s1316_s9, 2048 }
 0x581   : > { %p939_p4 = scmp.ne.s32.totalorder %s1261_s24, %s938_s17  ;;  %p943_p9 = scmp.lt.u32.totalorder %s1261_s24, %s1316_s9 }
 0x582   : > { %p944_p1 = scmp.lt.u32.totalorder %s942_s21, %s938_s17  ;;  %p946_p6 = scmp.lt.u32.totalorder %s938_s17, %s1261_s24 }
 0x583   : > { %p940_p5 = pnand %p939_p4, %p1323_p11 }
 0x584   : > { %p945_p3 = por %p944_p1, %p943_p9 }
 0x585   : > { %p941_p7 = pneg %p940_p5 }
 0x586   : > { %p947_p12 = por %p946_p6, %p945_p3 }
 0x588   : > { %p948_p13 = pnand %p947_p12, %p941_p7 }
 0x58a   : > { %951 = shalt.err (!%p948_p13)
}
 0x58b   : > { %s1000_s30 = smov 256   ;;  %s1001_s29 = smov 16  }
 0x58c   : > { %832 = dma.vmem_to_hbm [thread:$0]  (%p1323_p11), %s1256_s18, 1024, %s1261_s24, %s696_s2, %s1000_s30, %s1000_s30, %s1001_s29  }
 0x58d PF: > { %s724_s10 = sand.u32 1, %s978_s11   ;;  %p1324_p8 = scmp.ne.s32.totalorder %s1321_s23, 0 }
 0x58e   : > { %p1325_p10 = scmp.ge.s32.totalorder %s990_s14, 2  ;;  %s725_s15 = scalar_lea.sflag [#allocation5], %s724_s10 }
 0x590   : > { %p839_p0 = pnand %p1325_p10, %p1324_p8 }
 0x592   : > { %973 = dma.done.wait (!%p839_p0), %s725_s15, 1024  }
 0x593   : > { %975 = vsyncadd (!%p839_p0), %s725_s15, 4294966272  ;;  %p23_p2 = scmp.ge.s32.totalorder %s1080_s16, 4   ;;  %s1326_s11 = smov %s982_s12 }
 0x594   : > { %s1327_s12 = smov %s986_s13  ;;  %s1328_s13 = smov %s1092_s19 }
 0x595   : > { %s1329_s14 = smov %s1080_s16  ;;  %25 = sbr.rel (!%p23_p2) target bundleno = 7 (0x7), region = 101 }
 0x59c   :  { %730 = vsyncpa [#allocation4], 1 }
 0x59d   :  { %732 = vsyncpa [#allocation4 + $0x1], 1 }
 0x59e   :  { %733 = vsyncpa [#allocation5], 1 }
 0x59f   :  { %735 = vsyncpa [#allocation5 + $0x1], 1 }

</bundles_post_ra>
